<compile_context>
chip_gen: v6e
topology: v6e:2x2x1
jax: 0.10.0
libtpu: 0.0.40
codegen_flags: <defaults>
</compile_context>

<pallas_src>
import functools

import jax
import jax.numpy as jnp
from jax.experimental import pallas as pl
from jax.experimental.pallas import tpu as pltpu


def _heads_kernel(x_ref, w_ref, b_ref, o_ref):
    # x_ref : (TB, D)  VMEM tile of embeddings (streamed over the batch)
    # w_ref : (D, H)   packed head weights, VMEM-resident (tiny)
    # b_ref : (1, H)   packed head biases (f32)
    # o_ref : (TB, H)  sigmoid(x @ W + b)
    logits = jnp.dot(x_ref[...], w_ref[...],
                     preferred_element_type=jnp.float32)      # (TB, H), f32 acc
    logits = logits + b_ref[...]                              # (1, H) broadcast
    o_ref[...] = jax.nn.sigmoid(logits).astype(o_ref.dtype)


@functools.partial(jax.jit, static_argnames=("block_b",))
def embedding_heads_forward(x, w, b, *, block_b=1024):
    """sigmoid(x @ w + b) via a Pallas TPU kernel.

    x: (B, D) embeddings (f32 or bf16 -- used as-is, never re-materialized)
    w: (D, H) packed head weights
    b: (1, H) packed head biases
    returns: (B, H) float32 probabilities
    """
    B, D = x.shape
    Dw, H = w.shape
    assert D == Dw

    # Only the tiny weight matrix is cast to match x; the bias / epilogue stay f32.
    w = w.astype(x.dtype)
    b = b.reshape(1, H).astype(jnp.float32)

    itemsize = jnp.dtype(x.dtype).itemsize

    # VMEM budget: <= ~4 MiB per x buffer so 3 pipelined buffers + weights +
    # output sit far below v5e's 16 MiB default scoped limit and v7x's
    # 64 MiB/TC physical VMEM (explicit vmem_limit_bytes set below).
    max_rows = max(8, ((4 * 1024 * 1024) // (D * itemsize)) // 8 * 8)
    blk = max(8, (min(block_b, max_rows) // 8) * 8)

    if B <= blk:
        if B >= 256:
            # Split modest batches into two tiles so the ("parallel",) grid
            # axis gives both v7x TensorCores work.
            blk = ((((B + 1) // 2) + 7) // 8) * 8
        else:
            blk = B  # single tile; block dim == full array dim is always legal
    num_blocks = pl.cdiv(B, blk)   # partial edge block handled by Pallas masking

    if num_blocks >= 3:
        # Deeper pipelining keeps the HBM stream saturated across step boundaries.
        x_spec = pl.BlockSpec((blk, D), lambda i: (i, 0),
                              pipeline_mode=pl.Buffered(3))
    else:
        x_spec = pl.BlockSpec((blk, D), lambda i: (i, 0))

    cost = pl.CostEstimate(
        flops=2 * B * D * H,
        transcendentals=B * H,
        bytes_accessed=B * D * itemsize + D * H * itemsize + B * H * 4,
    )

    out = pl.pallas_call(
        _heads_kernel,
        out_shape=jax.ShapeDtypeStruct((B, H), jnp.float32),
        grid=(num_blocks,),
        in_specs=[
            x_spec,                                   # x tile streams over batch
            pl.BlockSpec((D, H), lambda i: (0, 0)),   # full weights, VMEM-resident
            pl.BlockSpec((1, H), lambda i: (0, 0)),   # full bias, VMEM-resident
        ],
        out_specs=pl.BlockSpec((blk, H), lambda i: (i, 0)),
        compiler_params=pltpu.CompilerParams(
            dimension_semantics=("parallel",),        # megacore splits the batch
            vmem_limit_bytes=32 * 1024 * 1024,
        ),
        cost_estimate=cost,
    )(x, w, b)

    return out                                        # (B, H), no pad/transpose ops


class EmbeddingClassifierPallas:
    """JAX/Pallas port of the PyTorch EmbeddingClassifier (inference mode)."""

    def __init__(self, config, embedding_dim, key):
        self.use_multi_head = config.get("use_multi_head", False)
        self.dropout_rate = config.get("dropout_rate", 0.2)  # inactive at eval
        self.embedding_dim = embedding_dim

        k1, k2, k3, k4 = jax.random.split(key, 4)
        # nn.Linear(embedding_dim, 1)-style init: U(-1/sqrt(D), 1/sqrt(D))
        bound = 1.0 / (embedding_dim ** 0.5)

        def lin(kw, kb):
            w = jax.random.uniform(kw, (embedding_dim, 1), jnp.float32, -bound, bound)
            b = jax.random.uniform(kb, (1, 1), jnp.float32, -bound, bound)
            return w, b

        if self.use_multi_head:
            wm, bm = lin(k1, k2)
            wa, ba = lin(k3, k4)
            # Pack both heads into one (D, 2) contraction.
            self.w = jnp.concatenate([wm, wa], axis=1)   # (D, 2)
            self.b = jnp.concatenate([bm, ba], axis=1)   # (1, 2)
        else:
            self.w, self.b = lin(k1, k2)                 # (D, 1), (1, 1)

    def __call__(self, x):
        out = embedding_heads_forward(x, self.w, self.b)
        if self.use_multi_head:
            main_output = out[:, 0:1]  # (B, 1)
            aux_output = out[:, 1:2]   # (B, 1)
            return main_output, aux_output
        return out  # (B, 1)


if __name__ == "__main__":
    key = jax.random.PRNGKey(0)
    k_param, k_param2, k_x, k_x2 = jax.random.split(key, 4)

    B, D = 8, 128  # small DINOv2-like embedding batch
    x = jax.random.normal(k_x, (B, D), dtype=jnp.float32)

    # Single-head path (default config).
    model = EmbeddingClassifierPallas({"use_multi_head": False}, D, k_param)
    out = jax.block_until_ready(model(x))
    assert out.shape == (B, 1)
    ref = jax.nn.sigmoid(
        jnp.dot(x, model.w, precision=jax.lax.Precision.HIGHEST) + model.b)
    assert jnp.allclose(out, ref, atol=2e-3), "mismatch vs reference (single head)"

    # Multi-head path.
    model_mh = EmbeddingClassifierPallas({"use_multi_head": True}, D, k_param2)
    main_out, aux_out = model_mh(x)
    main_out = jax.block_until_ready(main_out)
    aux_out = jax.block_until_ready(aux_out)
    assert main_out.shape == (B, 1) and aux_out.shape == (B, 1)
    ref_m = jax.nn.sigmoid(
        jnp.dot(x, model_mh.w, precision=jax.lax.Precision.HIGHEST) + model_mh.b)
    assert jnp.allclose(main_out, ref_m[:, 0:1], atol=2e-3)
    assert jnp.allclose(aux_out, ref_m[:, 1:2], atol=2e-3)

    # Non-multiple batch: exercises the cdiv partial edge block and the
    # >=256-row two-tile (megacore) split.
    B2, D2 = 300, 256
    x2 = jax.random.normal(k_x2, (B2, D2), dtype=jnp.float32)
    model2 = EmbeddingClassifierPallas({"use_multi_head": False}, D2, k_param)
    out2 = jax.block_until_ready(model2(x2))
    ref2 = jax.nn.sigmoid(
        jnp.dot(x2, model2.w, precision=jax.lax.Precision.HIGHEST) + model2.b)
    assert out2.shape == (B2, 1)
    assert jnp.allclose(out2, ref2, atol=2e-3), "mismatch vs reference (edge block)"

    # bf16 embeddings path: x is consumed as-is (no wrapper-side cast of x);
    # only the tiny weight matrix is cast, accumulation/sigmoid stay f32.
    out_bf16 = jax.block_until_ready(model2(x2.astype(jnp.bfloat16)))
    assert jnp.allclose(out_bf16, ref2, atol=2e-2), "bf16 path drifted too far"

    print("KERNEL_OK")
</pallas_src>

<mosaic_0001>
module attributes {stable_mosaic.version = 11 : i64} {
  func.func @_heads_kernel(%arg0: i32, %arg1: memref<8x128xf32, #tpu.memory_space<vmem>>, %arg2: memref<128x1xf32, #tpu.memory_space<vmem>>, %arg3: memref<1x1xf32, #tpu.memory_space<vmem>>, %arg4: memref<8x1xf32, #tpu.memory_space<vmem>>) attributes {dimension_semantics = [#tpu.dimension_semantics<parallel>], iteration_bounds = array<i64: 1>, scalar_prefetch = 0 : i64, scratch_operands = 0 : i64, tpu.core_type = #tpu.core_type<tc>, window_params = [{transform_indices = @transform_0, window_bounds = array<i64: 8, 128>}, {pipeline_mode = #tpu.pipeline_mode<synchronous>, transform_indices = @transform_1, window_bounds = array<i64: 128, 1>}, {pipeline_mode = #tpu.pipeline_mode<synchronous>, transform_indices = @transform_2, window_bounds = array<i64: 1, 1>}, {transform_indices = @transform_3, window_bounds = array<i64: 8, 1>}]} {
    %c0 = arith.constant 0 : index
    %c0_0 = arith.constant 0 : index
    %0 = vector.load %arg1[%c0, %c0_0] : memref<8x128xf32, #tpu.memory_space<vmem>>, vector<8x128xf32>
    %c0_1 = arith.constant 0 : index
    %c0_2 = arith.constant 0 : index
    %1 = vector.load %arg2[%c0_1, %c0_2] : memref<128x1xf32, #tpu.memory_space<vmem>>, vector<128x1xf32>
    %cst = arith.constant dense<0.000000e+00> : vector<8x1xf32>
    %2 = tpu.matmul %0, %1, %cst {dimension_numbers = #tpu.dot_dimension_numbers<[1], [0], [0], [1], [0, 0, 1, 1], [], []>} : vector<8x128xf32>, vector<128x1xf32>, vector<8x1xf32> -> vector<8x1xf32>
    %c0_3 = arith.constant 0 : index
    %c0_4 = arith.constant 0 : index
    %3 = vector.load %arg3[%c0_3, %c0_4] : memref<1x1xf32, #tpu.memory_space<vmem>>, vector<1x1xf32>
    %4 = vector.broadcast %3 : vector<1x1xf32> to vector<8x1xf32>
    %5 = arith.addf %2, %4 : vector<8x1xf32>
    %6 = arith.negf %5 : vector<8x1xf32>
    %7 = math.exp %6 : vector<8x1xf32>
    %cst_5 = arith.constant 1.000000e+00 : f32
    %8 = vector.broadcast %cst_5 : f32 to vector<8x1xf32>
    %9 = arith.addf %8, %7 : vector<8x1xf32>
    %10 = arith.divf %8, %9 : vector<8x1xf32>
    %c0_6 = arith.constant 0 : index
    %c0_7 = arith.constant 0 : index
    %11 = vector.load %arg4[%c0_6, %c0_7] : memref<8x1xf32, #tpu.memory_space<vmem>>, vector<8x1xf32>
    tpu.vector_store %arg4[%c0_6, %c0_7], %10 {strides = array<i32>} : memref<8x1xf32, #tpu.memory_space<vmem>>, vector<8x1xf32>,
    return
  }
  func.func @transform_0(%arg0: i32) -> (i32, i32) {
    %c0_i32 = arith.constant 0 : i32
    %c0_i32_0 = arith.constant 0 : i32
    return %arg0, %c0_i32 : i32, i32
  }
  func.func @transform_1(%arg0: i32) -> (i32, i32) {
    %c0_i32 = arith.constant 0 : i32
    %c0_i32_0 = arith.constant 0 : i32
    %c0_i32_1 = arith.constant 0 : i32
    return %c0_i32, %c0_i32_0 : i32, i32
  }
  func.func @transform_2(%arg0: i32) -> (i32, i32) {
    %c0_i32 = arith.constant 0 : i32
    %c0_i32_0 = arith.constant 0 : i32
    %c0_i32_1 = arith.constant 0 : i32
    return %c0_i32, %c0_i32_0 : i32, i32
  }
  func.func @transform_3(%arg0: i32) -> (i32, i32) {
    %c0_i32 = arith.constant 0 : i32
    %c0_i32_0 = arith.constant 0 : i32
    return %arg0, %c0_i32 : i32, i32
  }
}

</mosaic_0001>

<bundles_post_ra>
// kernel: embedding_heads_forward.1
= control target key start
LH: loop header
LB: loop body
LE: loop exit
PB: predicated region body
PF: predicated region fallthrough
CT: control target
= control target key end

     0   :  { %v182_v0 = vmov 0.0   ;;  %vm183_vm0 = vmmov 0   ;;  %vm116_vm1 = vcmask 7168   ;;  %s261_s1 = inlined_call_operand.vmem [shape: f32[128,1], index: 1, kind: input, shape index: {}]   ;;  %s262_s2 = inlined_call_operand.<no memory space> [shape: f32[1,1], index: 2, kind: input, shape index: {}]   ;;  %s263_s0 = inlined_call_operand.vmem [shape: f32[8,128], index: 0, kind: input, shape index: {}]   ;;  %s264_s3 = inlined_call_operand.vmem [shape: f32[8,1], index: 3, kind: output, shape index: {}]  }
   0x1   :  { %141 = vmatprep.subr.mxu0 %v182_v0  ;;  %v32_v1 = vld [vmem:[%s261_s1 + $0x78] sm:$0xff]  ;;  %v31_v2 = vld [vmem:[%s261_s1 + $0x70] sm:$0xff]  ;;  %173 = vmatprep.mubr.msk.f32.mxu0 %vm183_vm0, %v182_v0  ;;  %v8_v3 = vstv %s262_s2  ;;  %v30_v4 = vld [vmem:[%s261_s1 + $0x68] sm:$0xff] }
   0x2   :  { %142 = vmatpush3.msra.mxu0 %v32_v1  ;;  %9 = vst [vmem:[#allocation2] sm:$0x1] %v8_v3  ;;  %v29_v5 = vld [vmem:[%s261_s1 + $0x60] sm:$0xff]  ;;  %v28_v6 = vld [vmem:[%s261_s1 + $0x58] sm:$0xff]  ;;  %v27_v7 = vld [vmem:[%s261_s1 + $0x50] sm:$0xff] }
   0x3   :  { %143 = vmatprep.subr.mxu0 %v182_v0  ;;  %v26_v8 = vld [vmem:[%s261_s1 + $0x48] sm:$0xff]  ;;  %v25_v9 = vld [vmem:[%s261_s1 + $0x40] sm:$0xff]  ;;  %v24_v10 = vld [vmem:[%s261_s1 + $0x38] sm:$0xff] }
   0x4   :  { %144 = vmatpush3.msra.mxu0 %v31_v2  ;;  %v23_v11 = vld [vmem:[%s261_s1 + $0x30] sm:$0xff]  ;;  %v22_v12 = vld [vmem:[%s261_s1 + $0x28] sm:$0xff]  ;;  %v21_v13 = vld [vmem:[%s261_s1 + $0x20] sm:$0xff] }
   0x5   :  { %145 = vmatprep.subr.mxu0 %v182_v0  ;;  %v20_v14 = vld [vmem:[%s261_s1 + $0x18] sm:$0xff]  ;;  %v19_v15 = vld [vmem:[%s261_s1 + $0x10] sm:$0xff]  ;;  %v18_v16 = vld [vmem:[%s261_s1 + $0x8] sm:$0xff] }
   0x6   :  { %146 = vmatpush3.msra.mxu0 %v30_v4  ;;  %v17_v17 = vld [vmem:[%s261_s1] sm:$0xff] }
   0x7   :  { %147 = vmatprep.subr.mxu0 %v182_v0  ;;  %v16_v18 = vld [vmem:[%s263_s0] sm:$0xff] }
   0x8   :  { %148 = vmatpush3.msra.mxu0 %v29_v5 }
   0x9   :  { %149 = vmatprep.subr.mxu0 %v182_v0  ;;  %v122_v19 = vld [vmem:[#allocation2] ss:$0 sm:$0xff] }
   0xa   :  { %150 = vmatpush3.msra.mxu0 %v28_v6 }
   0xb   :  { %151 = vmatprep.subr.mxu0 %v182_v0 }
   0xc   :  { %152 = vmatpush3.msra.mxu0 %v27_v7 }
   0xd   :  { %153 = vmatprep.subr.mxu0 %v182_v0 }
   0xe   :  { %154 = vmatpush3.msra.mxu0 %v26_v8 }
   0xf   :  { %155 = vmatprep.subr.mxu0 %v182_v0 }
  0x10   :  { %156 = vmatpush3.msra.mxu0 %v25_v9 }
  0x11   :  { %157 = vmatprep.subr.mxu0 %v182_v0 }
  0x12   :  { %158 = vmatpush3.msra.mxu0 %v24_v10 }
  0x13   :  { %159 = vmatprep.subr.mxu0 %v182_v0 }
  0x14   :  { %160 = vmatpush3.msra.mxu0 %v23_v11 }
  0x15   :  { %161 = vmatprep.subr.mxu0 %v182_v0 }
  0x16   :  { %162 = vmatpush3.msra.mxu0 %v22_v12 }
  0x17   :  { %163 = vmatprep.subr.mxu0 %v182_v0 }
  0x18   :  { %164 = vmatpush3.msra.mxu0 %v21_v13 }
  0x19   :  { %165 = vmatprep.subr.mxu0 %v182_v0 }
  0x1a   :  { %166 = vmatpush3.msra.mxu0 %v20_v14 }
  0x1b   :  { %167 = vmatprep.subr.mxu0 %v182_v0 }
  0x1c   :  { %168 = vmatpush3.msra.mxu0 %v19_v15 }
  0x1d   :  { %169 = vmatprep.subr.mxu0 %v182_v0 }
  0x1e   :  { %170 = vmatpush3.msra.mxu0 %v18_v16 }
  0x1f   :  { %171 = vmatprep.subr.mxu0 %v182_v0 }
  0x20   :  { %172 = vmatpush3.msra.mxu0 %v17_v17 }
  0x21   :  { %174 = vmatmul.mubr.f32.vlgmr.msra.gmra.mxu0 %v16_v18 }
  0xe1   :  { %v106_v20 = vpop.f32.mrf.mxu0 }
  0xe2   :  { %v107_v21 = vadd.f32 %v122_v19, %v106_v20 }
  0xe3   :  { %v175_v22 = vpop.f32.mrf.mxu0 }
  0xe4   :  { %v123_v23 = vmul.f32 -1.442695, %v107_v21 }
  0xe6   :  { %178 = vpow2.f32 %v123_v23 }
  0xf3   :  { %v179_v24 = vpop.eup %178 }
  0xf4   :  { %v113_v25 = vadd.f32 1.0, %v179_v24 }
  0xf6   :  { %180 = vrcp.f32 %v113_v25 }
 0x103   :  { %v181_v26 = vpop.eup %180 }
 0x104   :  { %117 = vst.msk [vmem:[%s264_s3] sm:$0xff] %vm116_vm1, %v181_v26 }

</bundles_post_ra>
